<compile_context>
chip_gen: v6e
topology: v6e:2x2x1
jax: 0.10.0
libtpu: 0.0.40
codegen_flags: <defaults>
</compile_context>

<pallas_src>
import functools

import jax
import jax.numpy as jnp
from jax.experimental import pallas as pl
from jax.experimental.pallas import tpu as pltpu


def _round_up(n, m):
    return ((n + m - 1) // m) * m


# ----------------------------------------------------------------------------
# Fused Pallas kernel: relu(x @ Wih + bih) -> actor softmax + critic value
# ----------------------------------------------------------------------------
def _a2c_fused_kernel(x_ref, wih_ref, bih_ref, wa_ref, ba_ref, wc_ref, bc_ref,
                      inv_beta_ref, pi_ref, v_ref, *, n_act):
    # hidden layer: h = relu(x @ W_ih^T + b_ih)   (weights pre-transposed)
    x = x_ref[...]                                               # (1, Din_p)
    h = jnp.dot(x, wih_ref[...], preferred_element_type=jnp.float32) + bih_ref[...]
    h = jnp.maximum(h, 0.0)                                      # (1, H_p)

    # actor head + softmax with temperature beta over the valid action axis
    inv_beta = inv_beta_ref[0, 0]
    logits = (jnp.dot(h, wa_ref[...], preferred_element_type=jnp.float32)
              + ba_ref[...]) * inv_beta                          # (1, A_p)
    col = jax.lax.broadcasted_iota(jnp.int32, logits.shape, 1)
    logits = jnp.where(col < n_act, logits, jnp.full_like(logits, -1e30))
    z = logits - jnp.max(logits, axis=-1, keepdims=True)
    e = jnp.exp(z)
    pi_ref[...] = e / jnp.sum(e, axis=-1, keepdims=True)

    # critic head (single valid column, lane-padded to 128)
    v_ref[...] = (jnp.dot(h, wc_ref[...], preferred_element_type=jnp.float32)
                  + bc_ref[...])


# ----------------------------------------------------------------------------
# Wrapper: pad to lane-dense shapes, launch the single fused kernel, slice.
# ----------------------------------------------------------------------------
def a2c_forward(params, x, beta=1.0):
    """x: (dim_input,) state vector -> (pi: (dim_output,), v: (1,))."""
    assert beta > 0
    dim_hidden, dim_input = params["w_ih"].shape        # torch Linear: (out, in)
    dim_output = params["w_actor"].shape[0]

    f32 = jnp.float32
    din_p = _round_up(dim_input, 128)
    h_p = _round_up(dim_hidden, 128)
    a_p = _round_up(dim_output, 128)
    c_p = 128  # critic's single output column, padded to one full vreg lane row

    # Zero-padded, pre-transposed operands (zeros guarantee exact results).
    x2 = jnp.zeros((1, din_p), f32).at[0, :dim_input].set(x.astype(f32))
    w_ih = jnp.zeros((din_p, h_p), f32).at[:dim_input, :dim_hidden].set(
        params["w_ih"].T.astype(f32))
    b_ih = jnp.zeros((1, h_p), f32).at[0, :dim_hidden].set(params["b_ih"].astype(f32))
    w_a = jnp.zeros((h_p, a_p), f32).at[:dim_hidden, :dim_output].set(
        params["w_actor"].T.astype(f32))
    b_a = jnp.zeros((1, a_p), f32).at[0, :dim_output].set(params["b_actor"].astype(f32))
    w_c = jnp.zeros((h_p, c_p), f32).at[:dim_hidden, :1].set(
        params["w_critic"].T.astype(f32))
    b_c = jnp.zeros((1, c_p), f32).at[0, :1].set(params["b_critic"].astype(f32))
    inv_beta = jnp.full((1, 1), 1.0 / beta, f32)

    vmem = pl.BlockSpec(memory_space=pltpu.MemorySpace.VMEM)
    smem = pl.BlockSpec(memory_space=pltpu.MemorySpace.SMEM)

    pi_pad, v_pad = pl.pallas_call(
        functools.partial(_a2c_fused_kernel, n_act=dim_output),
        out_shape=(jax.ShapeDtypeStruct((1, a_p), f32),
                   jax.ShapeDtypeStruct((1, c_p), f32)),
        in_specs=[vmem, vmem, vmem, vmem, vmem, vmem, vmem, smem],
        out_specs=(vmem, vmem),
    )(x2, w_ih, b_ih, w_a, b_a, w_c, b_c, inv_beta)

    action_distribution = pi_pad[0, :dim_output]   # == softmax(squeeze(actor(h)/beta))
    value_estimate = v_pad[0, :1]                  # == critic(h), shape (1,)
    return action_distribution, value_estimate


# TODO(synk): pick_action (torch.distributions.Categorical sampling/log_prob)
# is not part of forward() and is left unimplemented.


if __name__ == "__main__":
    key = jax.random.PRNGKey(0)
    k = jax.random.split(key, 7)

    dim_input, dim_hidden, dim_output = 8, 64, 6
    beta = 1.0

    s = 0.1
    params = {
        "w_ih": s * jax.random.normal(k[0], (dim_hidden, dim_input), jnp.float32),
        "b_ih": s * jax.random.normal(k[1], (dim_hidden,), jnp.float32),
        "w_actor": s * jax.random.normal(k[2], (dim_output, dim_hidden), jnp.float32),
        "b_actor": s * jax.random.normal(k[3], (dim_output,), jnp.float32),
        "w_critic": s * jax.random.normal(k[4], (1, dim_hidden), jnp.float32),
        "b_critic": s * jax.random.normal(k[5], (1,), jnp.float32),
    }
    x = jax.random.normal(k[6], (dim_input,), jnp.float32)

    fwd = jax.jit(a2c_forward, static_argnames=("beta",))
    pi, v = fwd(params, x, beta=beta)
    jax.block_until_ready((pi, v))

    # Pure-JAX reference of the PyTorch forward.
    h_ref = jnp.maximum(x @ params["w_ih"].T + params["b_ih"], 0.0)
    pi_ref = jax.nn.softmax((h_ref @ params["w_actor"].T + params["b_actor"]) / beta,
                            axis=0)
    v_ref = h_ref @ params["w_critic"].T + params["b_critic"]

    assert pi.shape == (dim_output,), pi.shape
    assert v.shape == (1,), v.shape
    assert bool(jnp.all(jnp.isfinite(pi))) and bool(jnp.all(jnp.isfinite(v)))
    assert abs(float(jnp.sum(pi)) - 1.0) < 1e-5
    assert bool(jnp.allclose(pi, pi_ref, atol=1e-5, rtol=1e-5))
    assert bool(jnp.allclose(v, v_ref, atol=1e-5, rtol=1e-5))

    print("KERNEL_OK")
</pallas_src>

<mosaic_0001>
module attributes {stable_mosaic.version = 11 : i64} {
  func.func @_a2c_fused_kernel(%arg0: memref<1x128xf32, #tpu.memory_space<vmem>>, %arg1: memref<128x128xf32, #tpu.memory_space<vmem>>, %arg2: memref<1x128xf32, #tpu.memory_space<vmem>>, %arg3: memref<128x128xf32, #tpu.memory_space<vmem>>, %arg4: memref<1x128xf32, #tpu.memory_space<vmem>>, %arg5: memref<128x128xf32, #tpu.memory_space<vmem>>, %arg6: memref<1x128xf32, #tpu.memory_space<vmem>>, %arg7: memref<1x1xf32, #tpu.memory_space<smem>>, %arg8: memref<1x128xf32, #tpu.memory_space<vmem>>, %arg9: memref<1x128xf32, #tpu.memory_space<vmem>>) attributes {dimension_semantics = [], scalar_prefetch = 0 : i64, scratch_operands = 0 : i64, tpu.core_type = #tpu.core_type<tc>} {
    %c0 = arith.constant 0 : index
    %c0_0 = arith.constant 0 : index
    %0 = vector.load %arg0[%c0, %c0_0] : memref<1x128xf32, #tpu.memory_space<vmem>>, vector<1x128xf32>
    %c0_1 = arith.constant 0 : index
    %c0_2 = arith.constant 0 : index
    %1 = vector.load %arg1[%c0_1, %c0_2] : memref<128x128xf32, #tpu.memory_space<vmem>>, vector<128x128xf32>
    %cst = arith.constant dense<0.000000e+00> : vector<1x128xf32>
    %2 = tpu.matmul %0, %1, %cst {dimension_numbers = #tpu.dot_dimension_numbers<[1], [0], [0], [1], [0, 0, 1, 1], [], []>} : vector<1x128xf32>, vector<128x128xf32>, vector<1x128xf32> -> vector<1x128xf32>
    %c0_3 = arith.constant 0 : index
    %c0_4 = arith.constant 0 : index
    %3 = vector.load %arg2[%c0_3, %c0_4] : memref<1x128xf32, #tpu.memory_space<vmem>>, vector<1x128xf32>
    %4 = arith.addf %2, %3 : vector<1x128xf32>
    %cst_5 = arith.constant 0.000000e+00 : f32
    %5 = vector.broadcast %cst_5 : f32 to vector<1x128xf32>
    %6 = arith.maximumf %4, %5 : vector<1x128xf32>
    %c0_6 = arith.constant 0 : index
    %c0_7 = arith.constant 0 : index
    %7 = memref.load %arg7[%c0_6, %c0_7] : memref<1x1xf32, #tpu.memory_space<smem>>
    %c0_8 = arith.constant 0 : index
    %c0_9 = arith.constant 0 : index
    %8 = vector.load %arg3[%c0_8, %c0_9] : memref<128x128xf32, #tpu.memory_space<vmem>>, vector<128x128xf32>
    %cst_10 = arith.constant dense<0.000000e+00> : vector<1x128xf32>
    %9 = tpu.matmul %6, %8, %cst_10 {dimension_numbers = #tpu.dot_dimension_numbers<[1], [0], [0], [1], [0, 0, 1, 1], [], []>} : vector<1x128xf32>, vector<128x128xf32>, vector<1x128xf32> -> vector<1x128xf32>
    %c0_11 = arith.constant 0 : index
    %c0_12 = arith.constant 0 : index
    %10 = vector.load %arg4[%c0_11, %c0_12] : memref<1x128xf32, #tpu.memory_space<vmem>>, vector<1x128xf32>
    %11 = arith.addf %9, %10 : vector<1x128xf32>
    %12 = vector.broadcast %7 : f32 to vector<1x128xf32>
    %13 = arith.mulf %11, %12 : vector<1x128xf32>
    %14 = tpu.iota {dimensions = array<i32: 1>} : vector<1x128xi32>
    %c6_i32 = arith.constant 6 : i32
    %15 = vector.broadcast %c6_i32 : i32 to vector<1x128xi32>
    %16 = arith.cmpi slt, %14, %15 : vector<1x128xi32>
    %cst_13 = arith.constant -1.000000e+30 : f32
    %17 = vector.broadcast %cst_13 : f32 to vector<1x128xf32>
    %18 = arith.select %16, %13, %17 : vector<1x128xi1>, vector<1x128xf32>
    %cst_14 = arith.constant dense<0xFF800000> : vector<1xf32>
    %19 = vector.multi_reduction <maximumf>, %18, %cst_14 [1] : vector<1x128xf32> to vector<1xf32>
    %20 = vector.shape_cast %19 : vector<1xf32> to vector<1x1xf32>
    %21 = vector.broadcast %20 : vector<1x1xf32> to vector<1x128xf32>
    %22 = arith.subf %18, %21 : vector<1x128xf32>
    %23 = math.exp %22 : vector<1x128xf32>
    %cst_15 = arith.constant dense<0.000000e+00> : vector<1xf32>
    %24 = vector.multi_reduction <add>, %23, %cst_15 [1] : vector<1x128xf32> to vector<1xf32>
    %25 = vector.shape_cast %24 : vector<1xf32> to vector<1x1xf32>
    %26 = vector.broadcast %25 : vector<1x1xf32> to vector<1x128xf32>
    %27 = arith.divf %23, %26 : vector<1x128xf32>
    %c0_16 = arith.constant 0 : index
    %c0_17 = arith.constant 0 : index
    %28 = vector.load %arg8[%c0_16, %c0_17] : memref<1x128xf32, #tpu.memory_space<vmem>>, vector<1x128xf32>
    tpu.vector_store %arg8[%c0_16, %c0_17], %27 {strides = array<i32>} : memref<1x128xf32, #tpu.memory_space<vmem>>, vector<1x128xf32>,
    %c0_18 = arith.constant 0 : index
    %c0_19 = arith.constant 0 : index
    %29 = vector.load %arg5[%c0_18, %c0_19] : memref<128x128xf32, #tpu.memory_space<vmem>>, vector<128x128xf32>
    %cst_20 = arith.constant dense<0.000000e+00> : vector<1x128xf32>
    %30 = tpu.matmul %6, %29, %cst_20 {dimension_numbers = #tpu.dot_dimension_numbers<[1], [0], [0], [1], [0, 0, 1, 1], [], []>} : vector<1x128xf32>, vector<128x128xf32>, vector<1x128xf32> -> vector<1x128xf32>
    %c0_21 = arith.constant 0 : index
    %c0_22 = arith.constant 0 : index
    %31 = vector.load %arg6[%c0_21, %c0_22] : memref<1x128xf32, #tpu.memory_space<vmem>>, vector<1x128xf32>
    %32 = arith.addf %30, %31 : vector<1x128xf32>
    %c0_23 = arith.constant 0 : index
    %c0_24 = arith.constant 0 : index
    %33 = vector.load %arg9[%c0_23, %c0_24] : memref<1x128xf32, #tpu.memory_space<vmem>>, vector<1x128xf32>
    tpu.vector_store %arg9[%c0_23, %c0_24], %32 {strides = array<i32>} : memref<1x128xf32, #tpu.memory_space<vmem>>, vector<1x128xf32>,
    return
  }
}

</mosaic_0001>

<bundles_post_ra>
// kernel: a2c_forward.1
= control target key start
LH: loop header
LB: loop body
LE: loop exit
PB: predicated region body
PF: predicated region fallthrough
CT: control target
= control target key end

     0   :  { %v520_v1 = vmov 0.0   ;;  %vm521_vm0 = vmmov 0   ;;  %s792_s0 = inlined_call_operand.vmem [shape: f32[1,128], index: 0, kind: input, shape index: {}]   ;;  %s793_s1 = inlined_call_operand.vmem [shape: f32[128,128], index: 1, kind: input, shape index: {}]   ;;  %s794_s2 = inlined_call_operand.vmem [shape: f32[1,128], index: 2, kind: input, shape index: {}]   ;;  %s795_s3 = inlined_call_operand.vmem [shape: f32[128,128], index: 3, kind: input, shape index: {}]   ;;  %s796_s4 = inlined_call_operand.vmem [shape: f32[1,128], index: 4, kind: input, shape index: {}]   ;;  %s797_s5 = inlined_call_operand.vmem [shape: f32[128,128], index: 5, kind: input, shape index: {}]   ;;  %s798_s6 = inlined_call_operand.vmem [shape: f32[1,128], index: 6, kind: input, shape index: {}]   ;;  %s799_s7 = inlined_call_operand.<no memory space> [shape: f32[1,1], index: 7, kind: input, shape index: {}]   ;;  %s800_s8 = inlined_call_operand.vmem [shape: f32[1,128], index: 8, kind: output, shape index: {0}]   ;;  %s801_s9 = inlined_call_operand.hbm [shape: f32[1,128], index: 9, kind: output, shape index: {1}]  }
   0x1   :  { %v49_v0 = vld [vmem:[%s793_s1 + $0x78] sm:$0xff]  ;;  %386 = vmatprep.subr.mxu0 %v520_v1  ;;  %v48_v2 = vld [vmem:[%s793_s1 + $0x70] sm:$0xff]  ;;  %418 = vmatprep.mubr.msk.f32.mxu0 %vm521_vm0, %v520_v1  ;;  %v47_v3 = vld [vmem:[%s793_s1 + $0x68] sm:$0xff] }
   0x2   :  { %387 = vmatpush3.msra.mxu0 %v49_v0  ;;  %421 = vmatprep.subr.mxu1 %v520_v1  ;;  %v46_v4 = vld [vmem:[%s793_s1 + $0x60] sm:$0xff]  ;;  %v138_v5 = vld [vmem:[%s795_s3 + $0x78] sm:$0xff]  ;;  %v137_v6 = vld [vmem:[%s795_s3 + $0x70] sm:$0xff] }
   0x3   :  { %388 = vmatprep.subr.mxu0 %v520_v1  ;;  %453 = vmatprep.mubr.msk.f32.mxu1 %vm521_vm0, %v520_v1  ;;  %v45_v7 = vld [vmem:[%s793_s1 + $0x58] sm:$0xff]  ;;  %v136_v8 = vld [vmem:[%s795_s3 + $0x68] sm:$0xff]  ;;  %v44_v9 = vld [vmem:[%s793_s1 + $0x50] sm:$0xff] }
   0x4   :  { %389 = vmatpush3.msra.mxu0 %v48_v2  ;;  %422 = vmatpush3.msra.mxu1 %v138_v5  ;;  %v135_v10 = vld [vmem:[%s795_s3 + $0x60] sm:$0xff]  ;;  %v43_v11 = vld [vmem:[%s793_s1 + $0x48] sm:$0xff]  ;;  %v134_v12 = vld [vmem:[%s795_s3 + $0x58] sm:$0xff] }
   0x5   :  { %390 = vmatprep.subr.mxu0 %v520_v1  ;;  %423 = vmatprep.subr.mxu1 %v520_v1  ;;  %v42_v13 = vld [vmem:[%s793_s1 + $0x40] sm:$0xff]  ;;  %v133_v14 = vld [vmem:[%s795_s3 + $0x50] sm:$0xff] }
   0x6   :  { %391 = vmatpush3.msra.mxu0 %v47_v3  ;;  %424 = vmatpush3.msra.mxu1 %v137_v6 }
   0x7   :  { %392 = vmatprep.subr.mxu0 %v520_v1  ;;  %425 = vmatprep.subr.mxu1 %v520_v1 }
   0x8   :  { %393 = vmatpush3.msra.mxu0 %v46_v4  ;;  %426 = vmatpush3.msra.mxu1 %v136_v8 }
   0x9   :  { %394 = vmatprep.subr.mxu0 %v520_v1  ;;  %427 = vmatprep.subr.mxu1 %v520_v1 }
   0xa   :  { %395 = vmatpush3.msra.mxu0 %v45_v7  ;;  %428 = vmatpush3.msra.mxu1 %v135_v10 }
   0xb   :  { %396 = vmatprep.subr.mxu0 %v520_v1  ;;  %429 = vmatprep.subr.mxu1 %v520_v1 }
   0xc   :  { %397 = vmatpush3.msra.mxu0 %v44_v9  ;;  %430 = vmatpush3.msra.mxu1 %v134_v12 }
   0xd   :  { %398 = vmatprep.subr.mxu0 %v520_v1 }
   0xe   :  { %399 = vmatpush3.msra.mxu0 %v43_v11 }
   0xf   :  { %16 = vsyncpa [#allocation4], 0  ;;  %400 = vmatprep.subr.mxu0 %v520_v1  ;;  %v41_v15 = vld [vmem:[%s793_s1 + $0x38] sm:$0xff]  ;;  %431 = vmatprep.subr.mxu1 %v520_v1  ;;  %v132_v16 = vld [vmem:[%s795_s3 + $0x48] sm:$0xff]  ;;  %v212_v55 = vlaneseq  ;;  %v210_v60 = vstv %s799_s7  ;;  %vm216_vm2 = vcmask 1040384  }
  0x10   :  { %401 = vmatpush3.msra.mxu0 %v42_v13  ;;  %432 = vmatpush3.msra.mxu1 %v133_v14  ;;  %v40_v17 = vld [vmem:[%s793_s1 + $0x30] sm:$0xff]  ;;  %v131_v18 = vld [vmem:[%s795_s3 + $0x40] sm:$0xff]  ;;  %v39_v19 = vld [vmem:[%s793_s1 + $0x28] sm:$0xff] }
  0x11   :  { %402 = vmatprep.subr.mxu0 %v520_v1  ;;  %433 = vmatprep.subr.mxu1 %v520_v1  ;;  %v130_v20 = vld [vmem:[%s795_s3 + $0x38] sm:$0xff]  ;;  %v38_v21 = vld [vmem:[%s793_s1 + $0x20] sm:$0xff]  ;;  %v129_v22 = vld [vmem:[%s795_s3 + $0x30] sm:$0xff]  ;;  %v213_v58 = vand.u32 127, %v212_v55 }
  0x12   :  { %403 = vmatpush3.msra.mxu0 %v41_v15  ;;  %434 = vmatpush3.msra.mxu1 %v132_v16  ;;  %v37_v23 = vld [vmem:[%s793_s1 + $0x18] sm:$0xff]  ;;  %v128_v24 = vld [vmem:[%s795_s3 + $0x28] sm:$0xff]  ;;  %v36_v25 = vld [vmem:[%s793_s1 + $0x10] sm:$0xff] }
  0x13   :  { %404 = vmatprep.subr.mxu0 %v520_v1  ;;  %435 = vmatprep.subr.mxu1 %v520_v1  ;;  %v127_v26 = vld [vmem:[%s795_s3 + $0x20] sm:$0xff]  ;;  %v35_v27 = vld [vmem:[%s793_s1 + $0x8] sm:$0xff]  ;;  %v126_v28 = vld [vmem:[%s795_s3 + $0x18] sm:$0xff]  ;;  %vm214_vm1 = vcmp.lt.s32.totalorder %v213_v58, 6 }
  0x14   :  { %405 = vmatpush3.msra.mxu0 %v40_v17  ;;  %436 = vmatpush3.msra.mxu1 %v131_v18  ;;  %v34_v29 = vld [vmem:[%s793_s1] sm:$0xff]  ;;  %v244_v31 = vld [vmem:[%s797_s5 + $0x78] sm:$0xff]  ;;  %v243_v32 = vld [vmem:[%s797_s5 + $0x70] sm:$0xff] }
  0x15   :  { %406 = vmatprep.subr.mxu0 %v520_v1  ;;  %437 = vmatprep.subr.mxu1 %v520_v1  ;;  %v33_v30 = vld [vmem:[%s792_s0] sm:$0x1]  ;;  %v242_v33 = vld [vmem:[%s797_s5 + $0x68] sm:$0xff]  ;;  %v240_v35 = vld [vmem:[%s797_s5 + $0x58] sm:$0xff] }
  0x16   :  { %407 = vmatpush3.msra.mxu0 %v39_v19  ;;  %438 = vmatpush3.msra.mxu1 %v130_v20  ;;  %v241_v34 = vld [vmem:[%s797_s5 + $0x60] sm:$0xff]  ;;  %v239_v36 = vld [vmem:[%s797_s5 + $0x50] sm:$0xff]  ;;  %v238_v37 = vld [vmem:[%s797_s5 + $0x48] sm:$0xff] }
  0x17   :  { %408 = vmatprep.subr.mxu0 %v520_v1  ;;  %439 = vmatprep.subr.mxu1 %v520_v1  ;;  %v237_v38 = vld [vmem:[%s797_s5 + $0x40] sm:$0xff]  ;;  %v236_v39 = vld [vmem:[%s797_s5 + $0x38] sm:$0xff]  ;;  %v235_v40 = vld [vmem:[%s797_s5 + $0x30] sm:$0xff] }
  0x18   :  { %409 = vmatpush3.msra.mxu0 %v38_v21  ;;  %440 = vmatpush3.msra.mxu1 %v129_v22  ;;  %v234_v41 = vld [vmem:[%s797_s5 + $0x28] sm:$0xff]  ;;  %v233_v42 = vld [vmem:[%s797_s5 + $0x20] sm:$0xff]  ;;  %v232_v43 = vld [vmem:[%s797_s5 + $0x18] sm:$0xff] }
  0x19   :  { %410 = vmatprep.subr.mxu0 %v520_v1  ;;  %441 = vmatprep.subr.mxu1 %v520_v1  ;;  %v125_v44 = vld [vmem:[%s795_s3 + $0x10] sm:$0xff]  ;;  %v124_v46 = vld [vmem:[%s795_s3 + $0x8] sm:$0xff]  ;;  %v123_v48 = vld [vmem:[%s795_s3] sm:$0xff] }
  0x1a   :  { %411 = vmatpush3.msra.mxu0 %v37_v23  ;;  %442 = vmatpush3.msra.mxu1 %v128_v24  ;;  %v231_v45 = vld [vmem:[%s797_s5 + $0x10] sm:$0xff]  ;;  %v230_v47 = vld [vmem:[%s797_s5 + $0x8] sm:$0xff]  ;;  %v229_v49 = vld [vmem:[%s797_s5] sm:$0xff] }
  0x1b   :  { %412 = vmatprep.subr.mxu0 %v520_v1  ;;  %443 = vmatprep.subr.mxu1 %v520_v1  ;;  %v50_v50 = vld [vmem:[%s794_s2] sm:$0x1]  ;;  %s522_s2 = smov [#allocation3]  }
  0x1c   :  { %413 = vmatpush3.msra.mxu0 %v36_v25  ;;  %444 = vmatpush3.msra.mxu1 %v127_v26  ;;  %v139_v56 = vld [vmem:[%s796_s4] sm:$0x1]  ;;  %s325_s4 = sshll.u32 %s522_s2, 4  ;;  %s326_s4 = int_to_ptr.vmem [resolvable:$true] %s325_s4 }
  0x1d   :  { %414 = vmatprep.subr.mxu0 %v520_v1  ;;  %445 = vmatprep.subr.mxu1 %v520_v1  ;;  %v245_v57 = vld [vmem:[%s798_s6] sm:$0x1]  ;;  %s498_s6 = scalar_lea.vmem %s326_s4, 16  ;;  %s502_s7 = scalar_lea.vmem %s326_s4, 32 }
  0x1e   :  { %415 = vmatpush3.msra.mxu0 %v35_v27  ;;  %446 = vmatpush3.msra.mxu1 %v126_v28  ;;  %p499_p0 = scmp.ne.s32.totalorder %s326_s4, %s498_s6  ;;  %p503_p1 = scmp.lt.s32.totalorder %s326_s4, %s326_s4 }
  0x1f   :  { %416 = vmatprep.subr.mxu0 %v520_v1  ;;  %447 = vmatprep.subr.mxu1 %v520_v1  ;;  %p504_p2 = scmp.lt.s32.totalorder %s502_s7, %s498_s6 }
  0x20   :  { %417 = vmatpush3.msra.mxu0 %v34_v29  ;;  %448 = vmatpush3.msra.mxu1 %v125_v44 }
  0x21   :  { %419 = vmatmul.mubr.f32.vlgmr.msra.gmra.mxu0 %v33_v30  ;;  %456 = vmatprep.subr.mxu0 %v520_v1  ;;  %p505_p3 = por %p504_p2, %p503_p1 }
  0x22   :  { %457 = vmatpush3.msra.mxu0 %v244_v31  ;;  %488 = vmatprep.mubr.msk.f32.mxu0 %vm521_vm0, %v520_v1 }
  0x23   :  { %458 = vmatprep.subr.mxu0 %v520_v1  ;;  %449 = vmatprep.subr.mxu1 %v520_v1  ;;  %p506_p4 = pnand %p505_p3, %p499_p0 }
  0x24   :  { %459 = vmatpush3.msra.mxu0 %v243_v32  ;;  %450 = vmatpush3.msra.mxu1 %v124_v46 }
  0x25   :  { %460 = vmatprep.subr.mxu0 %v520_v1  ;;  %451 = vmatprep.subr.mxu1 %v520_v1 }
  0x26   :  { %461 = vmatpush3.msra.mxu0 %v242_v33  ;;  %452 = vmatpush3.msra.mxu1 %v123_v48 }
  0x27   :  { %462 = vmatprep.subr.mxu0 %v520_v1 }
  0x28   :  { %463 = vmatpush3.msra.mxu0 %v241_v34 }
  0x29   :  { %464 = vmatprep.subr.mxu0 %v520_v1 }
  0x2a   :  { %465 = vmatpush3.msra.mxu0 %v240_v35 }
  0x2b   :  { %466 = vmatprep.subr.mxu0 %v520_v1 }
  0x2c   :  { %467 = vmatpush3.msra.mxu0 %v239_v36 }
  0x2d   :  { %468 = vmatprep.subr.mxu0 %v520_v1 }
  0x2e   :  { %469 = vmatpush3.msra.mxu0 %v238_v37 }
  0x2f   :  { %470 = vmatprep.subr.mxu0 %v520_v1 }
  0x30   :  { %471 = vmatpush3.msra.mxu0 %v237_v38 }
  0x31   :  { %472 = vmatprep.subr.mxu0 %v520_v1 }
  0x32   :  { %473 = vmatpush3.msra.mxu0 %v236_v39 }
  0x33   :  { %474 = vmatprep.subr.mxu0 %v520_v1 }
  0x34   :  { %475 = vmatpush3.msra.mxu0 %v235_v40 }
  0x35   :  { %476 = vmatprep.subr.mxu0 %v520_v1 }
  0x36   :  { %477 = vmatpush3.msra.mxu0 %v234_v41 }
  0x37   :  { %478 = vmatprep.subr.mxu0 %v520_v1 }
  0x38   :  { %479 = vmatpush3.msra.mxu0 %v233_v42 }
  0x39   :  { %480 = vmatprep.subr.mxu0 %v520_v1 }
  0x3a   :  { %481 = vmatpush3.msra.mxu0 %v232_v43 }
  0x3b   :  { %482 = vmatprep.subr.mxu0 %v520_v1 }
  0x3c   :  { %483 = vmatpush3.msra.mxu0 %v231_v45 }
  0x3d   :  { %484 = vmatprep.subr.mxu0 %v520_v1 }
  0x3e   :  { %485 = vmatpush3.msra.mxu0 %v230_v47 }
  0x3f   :  { %486 = vmatprep.subr.mxu0 %v520_v1 }
  0x40   :  { %487 = vmatpush3.msra.mxu0 %v229_v49 }
  0xe1   :  { %v117_v51 = vpop.f32.mrf.mxu0 }
  0xe2   :  { %v118_v52 = vadd.f32 %v117_v51, %v50_v50 }
  0xe3   :  { %v420_v53 = vpop.f32.mrf.mxu0 }
  0xe4   :  { %v121_v54 = vmax.f32 %v118_v52, 0.0 }
  0xe6   :  { %454 = vmatmul.mubr.f32.vlgmr.msra.gmra.mxu1 %v121_v54  ;;  %489 = vmatmul.mubr.f32.vlgmr.msra.gmra.mxu0 %v121_v54 }
 0x1a6   :  { %v206_v59 = vpop.f32.mrf.mxu1  ;;  %v312_v61 = vpop.f32.mrf.mxu0 }
 0x1a7   :  { %v207_v62 = vadd.f32 %v206_v59, %v139_v56  ;;  %v313_v63 = vadd.f32 %v312_v61, %v245_v57 }
 0x1a8   :  { %v455_v0 = vpop.f32.mrf.mxu1  ;;  %v490_v1 = vpop.f32.mrf.mxu0 }
 0x1a9   :  { %v211_v2 = vmul.f32 %v210_v60, %v207_v62  ;;  %316 = vst [vmem:[#allocation3] sm:$0x1] %v313_v63 }
 0x1ab   :  { %v215_v3 = vsel %vm214_vm1, %v211_v2, -1e+30 }
 0x1ac   :  { %v217_v4 = vsel %vm216_vm2, %v215_v3, -inf }
 0x1ad   :  { %218 = vmax.xlane.f32.xlu0 %v217_v4 }
 0x236   :  { %v219_v5 = vpop.xlane.xlu0 %218 }
 0x237   :  { %v220_v6 = vsub.f32 %v215_v3, %v219_v5 }
 0x239   :  { %v221_v7 = vmul.f32 1.442695, %v220_v6 }
 0x23b   :  { %494 = vpow2.f32 %v221_v7 }
 0x248   :  { %v495_v8 = vpop.eup %494 }
 0x249   :  { %v223_v9 = vsel %vm216_vm2, %v495_v8, 0.0 }
 0x24a   :  { %224 = vadd.xlane.f32.xlu0 %v223_v9 }
 0x24b   :  { %509 = shalt.err (!%p506_p4)
}
 0x24c   :  { %328 = dma.vmem_to_hbm [thread:$0]  %s326_s4, 16, %s801_s9, [#allocation4]  }
 0x2d3   :  { %v225_v10 = vpop.xlane.xlu0 %224 }
 0x2d4   :  { %496 = vrcp.f32 %v225_v10 }
 0x2e1   :  { %v497_v11 = vpop.eup %496 }
 0x2e2   :  { %v227_v12 = vmul.f32 %v497_v11, %v495_v8 }
 0x2e4   :  { %228 = vst [vmem:[%s800_s8] sm:$0x1] %v227_v12 }
 0x2e5   :  { %518 = dma.done.wait [#allocation4], 16  }
 0x2e6   :  { %519 = vsyncadd [#allocation4], 4294967280 }
 0x2e7   :  { %334 = vsyncpa [#allocation4], 1 }

</bundles_post_ra>
